<compile_context>
chip_gen: v7x
topology: tpu7x:2x2x1
jax: 0.10.0
libtpu: 0.0.40
codegen_flags: <defaults>
</compile_context>

<pallas_src>
import functools

import numpy as np
import jax
import jax.numpy as jnp
from jax.experimental import pallas as pl
from jax.experimental.pallas import tpu as pltpu

_POS_COLS = 128  # lane-dense RHS: col 0 = ones, col 1 = pos_x, col 2 = pos_y


def _spatial_softmax_kernel(x_ref, pos_ref, out_ref, *, inv_temperature):
    # x_ref:   (ROW_BLK, HW)        feature rows (one row = one (n, c) pair)
    # pos_ref: (HW, 128)            [ones | pos_x | pos_y | zeros...]
    # out_ref: (ROW_BLK, 2)         [expected_x, expected_y] per row
    x = x_ref[...].astype(jnp.float32) * jnp.float32(inv_temperature)
    m = jnp.max(x, axis=-1, keepdims=True)        # numerically stable softmax
    e = jnp.exp(x - m)                            # (ROW_BLK, HW), values in (0, 1]

    # One MXU matmul yields [sum(e), sum(e*pos_x), sum(e*pos_y), 0...] per row.
    u = jnp.dot(e, pos_ref[...],
                preferred_element_type=jnp.float32,
                precision=jax.lax.Precision.HIGHEST)   # (ROW_BLK, 128)

    # Exact reciprocal: it touches only ROW_BLK elements, so approx=True buys
    # nothing here and full precision keeps tight accuracy vs. the reference.
    inv_denom = pl.reciprocal(u[:, 0:1], approx=False)  # (ROW_BLK, 1)
    out_ref[...] = (u[:, 1:3] * inv_denom).astype(out_ref.dtype)


def _round_up(x, m):
    return ((x + m - 1) // m) * m


def _pick_row_block(rows, hw, itemsize,
                    target_block_bytes=4 * 1024 * 1024,
                    max_row_block=2048):
    """Rows per grid step: large enough to hide the ~0.35us/step pipeline
    overhead and reach HBM roofline, small enough that the double-buffered
    input block stays well inside VMEM on every generation (v7x: 64 MiB)."""
    mult = 16 if itemsize == 2 else 8             # bf16 packs 16 rows/sublane tile
    rb = target_block_bytes // max(1, hw * itemsize)
    rb = max(mult, min(rb, max_row_block))
    rb = (rb // mult) * mult
    rows_padded = _round_up(rows, mult)
    rb = min(rb, rows_padded)
    # Prefer >= ~8 grid steps when there is enough work so the "parallel"
    # axis load-balances across megacore / v7x's two TensorCores.
    if rows_padded // rb < 8 and rows_padded >= 8 * mult:
        rb = max(mult, (rows_padded // (8 * mult)) * mult)
    return rb


def spatial_softmax(feature, pos_xy, temperature=1.0, *,
                    data_format="NCHW", row_block=None):
    """Pallas TPU SpatialSoftmax.

    feature: (N, C, H, W) if NCHW else (N, H, W, C); any float dtype
             (bf16 recommended: halves HBM read traffic).
    pos_xy:  (2, H*W) float32, rows = [pos_x, pos_y] (see make_pos_grid).
    Returns: (N, C*2) float32, interleaved [x0, y0, x1, y1, ...].
    """
    if data_format == "NHWC":
        feature = jnp.transpose(feature, (0, 3, 1, 2))
    N, C, H, W = feature.shape
    HW = H * W
    rows = N * C
    x2d = feature.reshape(rows, HW)               # pure reshape, no padding copy

    # Build the lane-dense (HW, 128) RHS: [ones | pos_x | pos_y | zeros...].
    ones = jnp.ones((1, HW), jnp.float32)
    pos_mat = jnp.concatenate([ones, pos_xy.astype(jnp.float32)], axis=0)  # (3, HW)
    pos_mat = jnp.pad(pos_mat, ((0, _POS_COLS - 3), (0, 0))).T             # (HW, 128)

    itemsize = jnp.dtype(x2d.dtype).itemsize
    if row_block is None:
        row_block = _pick_row_block(rows, HW, itemsize)
    grid = (pl.cdiv(rows, row_block),)

    inv_temperature = 1.0 / float(temperature)

    out = pl.pallas_call(
        functools.partial(_spatial_softmax_kernel,
                          inv_temperature=inv_temperature),
        out_shape=jax.ShapeDtypeStruct((rows, 2), jnp.float32),
        grid_spec=pltpu.PrefetchScalarGridSpec(
            num_scalar_prefetch=0,
            grid=grid,
            in_specs=[
                pl.BlockSpec((row_block, HW), lambda i: (i, 0)),
                pl.BlockSpec((HW, _POS_COLS), lambda i: (0, 0)),  # resident
            ],
            out_specs=pl.BlockSpec((row_block, 2), lambda i: (i, 0)),
        ),
        compiler_params=pltpu.CompilerParams(
            dimension_semantics=("parallel",),
            # Default scoped VMEM is 16 MiB (v5e) / 32 MiB (v6e, v7x); raise it
            # so the larger roofline-sized tiles always fit, while remaining
            # well under v7x's 64 MiB physical VMEM (actual use <= ~13 MiB).
            vmem_limit_bytes=48 * 1024 * 1024,
        ),
    )(x2d, pos_mat)

    return out.reshape(N, C * 2)      # interleaved [x0, y0, x1, y1, ...]


def make_pos_grid(height, width):
    # Matches: np.meshgrid(np.linspace(-1, 1, W), np.linspace(-1, 1, H))
    pos_x, pos_y = np.meshgrid(np.linspace(-1.0, 1.0, width),
                               np.linspace(-1.0, 1.0, height))
    pos_x = pos_x.reshape(height * width).astype(np.float32)
    pos_y = pos_y.reshape(height * width).astype(np.float32)
    return jnp.asarray(np.stack([pos_x, pos_y], axis=0))  # (2, H*W)


def spatial_softmax_reference(feature, pos_xy, temperature=1.0):
    N, C, H, W = feature.shape
    f = feature.reshape(N, C, H * W).astype(jnp.float32) / temperature
    p = jax.nn.softmax(f, axis=-1)
    ex = jnp.sum(pos_xy[0] * p, axis=-1)
    ey = jnp.sum(pos_xy[1] * p, axis=-1)
    return jnp.stack([ex, ey], axis=-1).reshape(N, C * 2)


if __name__ == "__main__":
    N, C, H, W = 2, 4, 16, 16
    temperature = 1.0  # matches SpatialSoftmax(temperature=None) -> 1.0

    key = jax.random.PRNGKey(0)
    feature = jax.random.normal(key, (N, C, H, W), dtype=jnp.float32)
    pos_xy = make_pos_grid(H, W)

    out = spatial_softmax(feature, pos_xy, temperature)
    out = jax.block_until_ready(out)

    ref = spatial_softmax_reference(feature, pos_xy, temperature)
    np.testing.assert_allclose(np.asarray(out), np.asarray(ref),
                               rtol=1e-4, atol=1e-4)
    assert out.shape == (N, C * 2)

    print("KERNEL_OK")
</pallas_src>

<mosaic_0001>
module attributes {stable_mosaic.version = 11 : i64} {
  func.func @_spatial_softmax_kernel(%arg0: i32, %arg1: memref<8x256xf32, #tpu.memory_space<vmem>>, %arg2: memref<256x128xf32, #tpu.memory_space<vmem>>, %arg3: memref<8x2xf32, #tpu.memory_space<vmem>>) attributes {dimension_semantics = [#tpu.dimension_semantics<parallel>], iteration_bounds = array<i64: 1>, scalar_prefetch = 0 : i64, scratch_operands = 0 : i64, tpu.core_type = #tpu.core_type<tc>, window_params = [{transform_indices = @transform_0, window_bounds = array<i64: 8, 256>}, {pipeline_mode = #tpu.pipeline_mode<synchronous>, transform_indices = @transform_1, window_bounds = array<i64: 256, 128>}, {transform_indices = @transform_2, window_bounds = array<i64: 8, 2>}]} {
    %c0 = arith.constant 0 : index
    %c0_0 = arith.constant 0 : index
    %0 = vector.load %arg1[%c0, %c0_0] : memref<8x256xf32, #tpu.memory_space<vmem>>, vector<8x256xf32>
    %cst = arith.constant 1.000000e+00 : f32
    %1 = vector.broadcast %cst : f32 to vector<8x256xf32>
    %2 = arith.mulf %0, %1 : vector<8x256xf32>
    %cst_1 = arith.constant dense<0xFF800000> : vector<8xf32>
    %3 = vector.multi_reduction <maximumf>, %2, %cst_1 [1] : vector<8x256xf32> to vector<8xf32>
    %4 = vector.shape_cast %3 : vector<8xf32> to vector<8x1xf32>
    %5 = vector.broadcast %4 : vector<8x1xf32> to vector<8x256xf32>
    %6 = arith.subf %2, %5 : vector<8x256xf32>
    %7 = math.exp %6 : vector<8x256xf32>
    %c0_2 = arith.constant 0 : index
    %c0_3 = arith.constant 0 : index
    %8 = vector.load %arg2[%c0_2, %c0_3] : memref<256x128xf32, #tpu.memory_space<vmem>>, vector<256x128xf32>
    %cst_4 = arith.constant dense<0.000000e+00> : vector<8x128xf32>
    %9 = tpu.matmul %7, %8, %cst_4 {dimension_numbers = #tpu.dot_dimension_numbers<[1], [0], [0], [1], [0, 0, 1, 1], [], []>, precision = #tpu.contract_precision<fp32>} : vector<8x256xf32>, vector<256x128xf32>, vector<8x128xf32> -> vector<8x128xf32>
    %10 = vector.extract_strided_slice %9 {offsets = [0, 0], sizes = [8, 1], strides = [1, 1]} : vector<8x128xf32> to vector<8x1xf32>
    %11 = tpu.reciprocal %10 : vector<8x1xf32> -> vector<8x1xf32>
    %12 = vector.extract_strided_slice %9 {offsets = [0, 1], sizes = [8, 2], strides = [1, 1]} : vector<8x128xf32> to vector<8x2xf32>
    %13 = vector.broadcast %11 : vector<8x1xf32> to vector<8x2xf32>
    %14 = arith.mulf %12, %13 : vector<8x2xf32>
    %c0_5 = arith.constant 0 : index
    %c0_6 = arith.constant 0 : index
    %15 = vector.load %arg3[%c0_5, %c0_6] : memref<8x2xf32, #tpu.memory_space<vmem>>, vector<8x2xf32>
    tpu.vector_store %arg3[%c0_5, %c0_6], %14 {strides = array<i32>} : memref<8x2xf32, #tpu.memory_space<vmem>>, vector<8x2xf32>,
    return
  }
  func.func @transform_0(%arg0: i32) -> (i32, i32) {
    %c0_i32 = arith.constant 0 : i32
    %c0_i32_0 = arith.constant 0 : i32
    return %arg0, %c0_i32 : i32, i32
  }
  func.func @transform_1(%arg0: i32) -> (i32, i32) {
    %c0_i32 = arith.constant 0 : i32
    %c0_i32_0 = arith.constant 0 : i32
    %c0_i32_1 = arith.constant 0 : i32
    return %c0_i32, %c0_i32_0 : i32, i32
  }
  func.func @transform_2(%arg0: i32) -> (i32, i32) {
    %c0_i32 = arith.constant 0 : i32
    %c0_i32_0 = arith.constant 0 : i32
    return %arg0, %c0_i32 : i32, i32
  }
}

</mosaic_0001>

<bundles_post_ra>
// kernel: tpu_custom_call.1
= control target key start
LH: loop header
LB: loop body
LE: loop exit
PB: predicated region body
PF: predicated region fallthrough
CT: control target
= control target key end

     0   :  { %7 = vsyncpa [#allocation3], 0  ;;  %s1998_s0 = inlined_call_operand.hbm [shape: f32[8,256], index: 0, kind: input, shape index: {}]   ;;  %s1999_s1 = inlined_call_operand.hbm [shape: f32[256,128], index: 1, kind: input, shape index: {}]   ;;  %s2000_s2 = inlined_call_operand.vmem [shape: f32[8,2], index: 2, kind: output, shape index: {}]  }
   0x1   :  { %8 = vsyncpa [#allocation5], 0  ;;  %s1424_s9 = smov [#allocation2]   ;;  %s1425_s11 = smov [#allocation4]  }
   0x2   :  { %s15_s10 = sshll.u32 %s1424_s9, 4  ;;  %s24_s12 = sshll.u32 %s1425_s11, 4  ;;  %s16_s10 = int_to_ptr.vmem [resolvable:$true] %s15_s10  ;;  %s1445_s12 = int_to_ptr.vmem [resolvable:$true] %s24_s12 }
   0x3   :  { %s1376_s15 = scalar_lea.hbm %s1998_s0, 256 }
   0x4   :  { %p1377_p0 = scmp.ne.s32.totalorder %s1998_s0, %s1376_s15  ;;  %p1380_p1 = scmp.lt.u32.totalorder %s1376_s15, %s1998_s0 }
   0x6   :  { %p1382_p2 = pnand %p1380_p1, %p1377_p0 }
   0x8   :  { %1385 = shalt.err (!%p1382_p2)
}
   0x9   :  { %s1386_s20 = scalar_lea.vmem %s16_s10, 256  ;;  %p1391_p4 = scmp.lt.s32.totalorder %s16_s10, %s16_s10 }
   0xa   :  { %p1387_p3 = scmp.ne.s32.totalorder %s16_s10, %s1386_s20  ;;  %p1392_p5 = scmp.lt.s32.totalorder %s1386_s20, %s1386_s20 }
   0xc   :  { %p1393_p6 = por %p1392_p5, %p1391_p4 }
   0xe   :  { %p1394_p7 = pnand %p1393_p6, %p1387_p3 }
  0x10   :  { %1397 = shalt.err (!%p1394_p7)
}
  0x11   :  { %18 = dma.hbm_to_vmem [thread:$0]  %s1998_s0, 256, %s16_s10, [#allocation3]  }
  0x12   :  { %s1398_s25 = scalar_lea.hbm %s1999_s1, 4096 }
  0x13   :  { %p1399_p8 = scmp.ne.s32.totalorder %s1999_s1, %s1398_s25  ;;  %p1402_p9 = scmp.lt.u32.totalorder %s1398_s25, %s1999_s1 }
  0x15   :  { %p1404_p10 = pnand %p1402_p9, %p1399_p8 }
  0x17   :  { %1407 = shalt.err (!%p1404_p10)
}
  0x18   :  { %s1408_s30 = scalar_lea.vmem %s1445_s12, 4096  ;;  %p1413_p12 = scmp.lt.s32.totalorder %s1445_s12, %s1445_s12 }
  0x19   :  { %p1409_p11 = scmp.ne.s32.totalorder %s1445_s12, %s1408_s30  ;;  %p1414_p13 = scmp.lt.s32.totalorder %s1408_s30, %s1408_s30 }
  0x1b   :  { %p1415_p0 = por %p1414_p13, %p1413_p12 }
  0x1d   :  { %p1416_p1 = pnand %p1415_p0, %p1409_p11 }
  0x1f   :  { %1419 = shalt.err (!%p1416_p1)
}
  0x20   :  { %s1426_s0 = smov 128   ;;  %s1427_s3 = smov 8  }
  0x21   :  { %30 = dma.hbm_to_vmem [thread:$0]  %s1999_s1, 4096, %s1445_s12, [#allocation5], %s1426_s0, %s1426_s0, %s1427_s3  }
  0x22   :  { %1420 = dma.done.wait [#allocation3], 256  }
  0x23   :  { %1421 = vsyncadd [#allocation3], 4294967040 }
  0x24   :  { %1422 = dma.done.wait [#allocation5], 4096  }
  0x25   :  { %1423 = vsyncadd [#allocation5], 4294963200  ;;  %v1476_v0 = vld [vmem:[#allocation2] sm:$0xff]  ;;  %v1478_v1 = vld [vmem:[#allocation2 + $0x8] sm:$0xff]  ;;  %s1429_s1 = smov 127   ;;  %vm953_vm0 = vcmask 15360  }
  0x26   :  { %v64_v2 = vld [vmem:[#allocation4 + $0x80] sm:$0xff]  ;;  %v39_v3 = vmax.f32 %v1476_v0, %v1478_v1  ;;  %v65_v4 = vld [vmem:[#allocation4 + $0x88] sm:$0xff]  ;;  %v66_v11 = vld [vmem:[#allocation4 + $0x90] sm:$0xff] }
  0x27   :  { %v129_v5 = vand.u32 4294901760, %v64_v2  ;;  %v48_v6 = vld [vmem:[#allocation4] sm:$0xff]  ;;  %v49_v7 = vld [vmem:[#allocation4 + $0x8] sm:$0xff]  ;;  %v132_v8 = vand.u32 4294901760, %v65_v4  ;;  %v67_v12 = vld [vmem:[#allocation4 + $0x98] sm:$0xff]  ;;  %v135_v15 = vand.u32 4294901760, %v66_v11 }
  0x28   :  { %v81_v9 = vand.u32 4294901760, %v48_v6  ;;  %v84_v10 = vand.u32 4294901760, %v49_v7  ;;  %v1482_v13 = vld [vmem:[#allocation4 + $0x10] sm:$0xff]  ;;  %40 = vmax.xlane.f32.xlu0 %v39_v3  ;;  %v138_v16 = vand.u32 4294901760, %v67_v12  ;;  %v1486_v17 = vld [vmem:[#allocation4 + $0x18] sm:$0xff]  ;;  %v1537_v43 = vld [vmem:[#allocation4 + $0xa0] sm:$0xff] }
  0x29   :  { %v1484_v14 = vsub.f32 %v64_v2, %v129_v5  ;;  %v87_v18 = vand.u32 4294901760, %v1482_v13  ;;  %v1489_v19 = vsub.f32 %v65_v4, %v132_v8  ;;  %v90_v22 = vand.u32 4294901760, %v1486_v17  ;;  %v1542_v48 = vld [vmem:[#allocation4 + $0xa8] sm:$0xff]  ;;  %v1544_v49 = vld [vmem:[#allocation4 + $0x20] sm:$0xff]  ;;  %v1551_v59 = vld [vmem:[#allocation4 + $0xb0] sm:$0xff] }
  0x2a   :  { %v1491_v20 = vsub.f32 %v48_v6, %v81_v9  ;;  %v1493_v21 = vsub.f32 %v49_v7, %v84_v10  ;;  %v1497_v24 = vsub.f32 %v66_v11, %v135_v15  ;;  %v1499_v25 = vsub.f32 %v67_v12, %v138_v16  ;;  %v1548_v54 = vld [vmem:[#allocation4 + $0x28] sm:$0xff]  ;;  %v1553_v60 = vld [vmem:[#allocation4 + $0xb8] sm:$0xff]  ;;  %v1560_v3 = vld [vmem:[#allocation4 + $0x30] sm:$0xff] }
  0x2b   :  { %v2012_v23 = vand.u32 4294901760, %v1484_v14  ;;  %v1504_v26 = vsub.f32 %v1482_v13, %v87_v18  ;;  %v2011_v27 = vand.u32 4294901760, %v1489_v19  ;;  %v1510_v30 = vsub.f32 %v1486_v17, %v90_v22  ;;  %v1579_v12 = vld [vmem:[#allocation4 + $0x38] sm:$0xff] }
  0x2c   :  { %v2010_v28 = vand.u32 4294901760, %v1491_v20  ;;  %v2009_v29 = vand.u32 4294901760, %v1493_v21  ;;  %v2008_v32 = vand.u32 4294901760, %v1497_v24  ;;  %v2007_v33 = vand.u32 4294901760, %v1499_v25 }
  0x2d   :  { %v308_v31 = vsub.f32 %v1484_v14, %v2012_v23  ;;  %v2006_v34 = vand.u32 4294901760, %v1504_v26  ;;  %v315_v35 = vsub.f32 %v1489_v19, %v2011_v27  ;;  %v2003_v38 = vand.u32 4294901760, %v1510_v30 }
  0x2e   :  { %v196_v36 = vsub.f32 %v1491_v20, %v2010_v28  ;;  %v203_v37 = vsub.f32 %v1493_v21, %v2009_v29  ;;  %v322_v40 = vsub.f32 %v1497_v24, %v2008_v32  ;;  %v329_v41 = vsub.f32 %v1499_v25, %v2007_v33  ;;  %v1720_v32 = vld [vmem:[#allocation4 + $0xe0] sm:$0xff]  ;;  %v1722_v29 = vld [vmem:[#allocation4 + $0xe8] sm:$0xff] }
  0x2f   :  { %v309_v39 = vand.u32 4294901760, %v308_v31  ;;  %v210_v42 = vsub.f32 %v1504_v26, %v2006_v34  ;;  %v316_v44 = vand.u32 4294901760, %v315_v35  ;;  %v217_v47 = vsub.f32 %v1510_v30, %v2003_v38 }
  0x30   :  { %v197_v45 = vand.u32 4294901760, %v196_v36  ;;  %v204_v46 = vand.u32 4294901760, %v203_v37  ;;  %v323_v50 = vand.u32 4294901760, %v322_v40  ;;  %v330_v51 = vand.u32 4294901760, %v329_v41 }
  0x31   :  { %v211_v52 = vand.u32 4294901760, %v210_v42  ;;  %v1546_v53 = vpack.c.bf16 %v132_v8, %v129_v5  ;;  %v1203_v55 = vpack.c.bf16 %v316_v44, %v309_v39  ;;  %v218_v57 = vand.u32 4294901760, %v217_v47 }
  0x32   :  { %v1205_v56 = vpack.c.bf16 %v204_v46, %v197_v45  ;;  %v141_v58 = vand.u32 4294901760, %v1537_v43  ;;  %v1207_v61 = vpack.c.bf16 %v330_v51, %v323_v50  ;;  %v144_v62 = vand.u32 4294901760, %v1542_v48  ;;  %v1625_v50 = vld [vmem:[#allocation4 + $0xc0] sm:$0xff] }
  0x33   :  { %1172 = vmatprep.subr.bf16.mxu0 %v1546_v53  ;;  %v1557_v63 = vpack.c.bf16 %v84_v10, %v81_v9  ;;  %v93_v2 = vand.u32 4294901760, %v1544_v49  ;;  %1204 = vmatprep.subr.bf16.mxu1 %v1203_v55  ;;  %v1209_v4 = vpack.c.bf16 %v218_v57, %v211_v52  ;;  %v96_v6 = vand.u32 4294901760, %v1548_v54 }
  0x34   :  { %v1563_v5 = vsub.f32 %v1537_v43, %v141_v58  ;;  %v1566_v7 = vpack.c.bf16 %v138_v16, %v135_v15  ;;  %1206 = vmatpush3.bf16.msra.mxu1 %v1205_v56  ;;  %v1569_v8 = vsub.f32 %v1542_v48, %v144_v62  ;;  %v147_v10 = vand.u32 4294901760, %v1551_v59  ;;  %v1633_v56 = vld [vmem:[#allocation4 + $0xc8] sm:$0xff] }
  0x35   :  { %1174 = vmatpush3.bf16.msra.mxu0 %v1557_v63  ;;  %v1575_v9 = vsub.f32 %v1544_v49, %v93_v2  ;;  %v150_v11 = vand.u32 4294901760, %v1553_v60  ;;  %1208 = vmatprep.subr.bf16.mxu1 %v1207_v61  ;;  %v1583_v16 = vsub.f32 %v1548_v54, %v96_v6  ;;  %v1588_v17 = vpack.c.bf16 %v90_v22, %v87_v18 }
  0x36   :  { %v2024_v15 = vand.u32 4294901760, %v1563_v5  ;;  %1176 = vmatprep.subr.bf16.mxu0 %v1566_v7  ;;  %v99_v31 = vand.u32 4294901760, %v1560_v3  ;;  %v2022_v35 = vand.u32 4294901760, %v1569_v8  ;;  %v1594_v37 = vsub.f32 %v1551_v59, %v147_v10 }
  0x37   :  { %v2019_v36 = vand.u32 4294901760, %v1575_v9  ;;  %v1597_v39 = vsub.f32 %v1553_v60, %v150_v11  ;;  %v2018_v13 = vand.u32 4294901760, %v1583_v16  ;;  %v102_v18 = vand.u32 4294901760, %v1579_v12 }
  0x38   :  { %v336_v40 = vsub.f32 %v1563_v5, %v2024_v15  ;;  %v1607_v22 = vsub.f32 %v1560_v3, %v99_v31  ;;  %1210 = vmatpush3.bf16.msra.mxu1 %v1209_v4  ;;  %v343_v41 = vsub.f32 %v1569_v8, %v2022_v35  ;;  %v2001_v43 = vand.u32 4294901760, %v1594_v37  ;;  %v1641_v4 = vld [vmem:[#allocation4 + $0x40] sm:$0xff] }
  0x39   :  { %v224_v42 = vsub.f32 %v1575_v9, %v2019_v36  ;;  %v2002_v44 = vand.u32 4294901760, %v1597_v39  ;;  %1178 = vmatpush3.bf16.msra.mxu0 %v1588_v17  ;;  %v231_v46 = vsub.f32 %v1583_v16, %v2018_v13  ;;  %v1623_v48 = vsub.f32 %v1579_v12, %v102_v18  ;;  %v61_v36 = vld [vmem:[#allocation4 + $0x68] sm:$0xff] }
  0x3a   :  { %v337_v45 = vand.u32 4294901760, %v336_v40  ;;  %v2004_v47 = vand.u32 4294901760, %v1607_v22  ;;  %v344_v51 = vand.u32 4294901760, %v343_v41  ;;  %v350_v54 = vsub.f32 %v1594_v37, %v2001_v43  ;;  %v1644_v43 = vld [vmem:[#allocation4 + $0x48] sm:$0xff] }
  0x3b   :  { %v225_v52 = vand.u32 4294901760, %v224_v42  ;;  %v357_v55 = vsub.f32 %v1597_v39, %v2002_v44  ;;  %v232_v57 = vand.u32 4294901760, %v231_v46  ;;  %v2005_v60 = vand.u32 4294901760, %v1623_v48 }
  0x3c   :  { %v238_v59 = vsub.f32 %v1607_v22, %v2004_v47  ;;  %v1639_v61 = vpack.c.bf16 %v144_v62, %v141_v58  ;;  %v1211_v12 = vpack.c.bf16 %v344_v51, %v337_v45  ;;  %v351_v40 = vand.u32 4294901760, %v350_v54  ;;  %v1651_v62 = vld [vmem:[#allocation4 + $0xd0] sm:$0xff]  ;;  %v1653_v47 = vld [vmem:[#allocation4 + $0xd8] sm:$0xff] }
  0x3d   :  { %v358_v41 = vand.u32 4294901760, %v357_v55  ;;  %v153_v42 = vand.u32 4294901760, %v1625_v50  ;;  %v1213_v44 = vpack.c.bf16 %v232_v57, %v225_v52  ;;  %v245_v46 = vsub.f32 %v1623_v48, %v2005_v60 }
  0x3e   :  { %v239_v38 = vand.u32 4294901760, %v238_v59  ;;  %1180 = vmatprep.subr.bf16.mxu0 %v1639_v61  ;;  %v156_v58 = vand.u32 4294901760, %v1633_v56  ;;  %1212 = vmatprep.subr.bf16.mxu1 %v1211_v12  ;;  %v1660_v52 = vpack.c.bf16 %v96_v6, %v93_v2  ;;  %v105_v54 = vand.u32 4294901760, %v1641_v4 }
  0x3f   :  { %v1215_v45 = vpack.c.bf16 %v358_v41, %v351_v40  ;;  %v1656_v51 = vsub.f32 %v1625_v50, %v153_v42  ;;  %1214 = vmatpush3.bf16.msra.mxu1 %v1213_v44  ;;  %v246_v55 = vand.u32 4294901760, %v245_v46  ;;  %v108_v59 = vand.u32 4294901760, %v1644_v43  ;;  %v1676_v44 = vld [vmem:[#allocation4 + $0x50] sm:$0xff]  ;;  %v1678_v50 = vld [vmem:[#allocation4 + $0x58] sm:$0xff] }
  0x40   :  { %2043 = vst [vmem:[#allocation8_spill] sm:$0xff] %v1660_v52  ;;  %v1664_v57 = vsub.f32 %v1633_v56, %v156_v58  ;;  %v1667_v60 = vpack.c.bf16 %v150_v11, %v147_v10  ;;  %1182 = vmatpush3.bf16.msra.mxu0 %v1660_v52  ;;  %v1672_v49 = vsub.f32 %v1641_v4, %v105_v54  ;;  %v159_v2 = vand.u32 4294901760, %v1651_v62 }
  0x41   :  { %1216 = vmatprep.subr.bf16.mxu1 %v1215_v45  ;;  %v2016_v12 = vand.u32 4294901760, %v1656_v51  ;;  %v162_v6 = vand.u32 4294901760, %v1653_v47  ;;  %v1217_v56 = vpack.c.bf16 %v246_v55, %v239_v38  ;;  %v1682_v11 = vsub.f32 %v1644_v43, %v108_v59 }
  0x42   :  { %2044 = vst [vmem:[#allocation9_spill] sm:$0xff] %v1667_v60  ;;  %v2015_v10 = vand.u32 4294901760, %v1664_v57  ;;  %1184 = vmatprep.subr.bf16.mxu0 %v1667_v60  ;;  %v1687_v4 = vpack.c.bf16 %v102_v18, %v99_v31  ;;  %v2014_v41 = vand.u32 4294901760, %v1672_v49  ;;  %v1694_v46 = vsub.f32 %v1651_v62, %v159_v2 }
  0x43   :  { %v364_v40 = vsub.f32 %v1656_v51, %v2016_v12  ;;  %v1697_v38 = vsub.f32 %v1653_v47, %v162_v6  ;;  %1218 = vmatpush3.bf16.msra.mxu1 %v1217_v56  ;;  %v2013_v3 = vand.u32 4294901760, %v1682_v11  ;;  %v111_v31 = vand.u32 4294901760, %v1676_v44 }
  0x44   :  { %2045 = vst [vmem:[#allocation10_spill] sm:$0xff] %v1687_v4  ;;  %v371_v43 = vsub.f32 %v1664_v57, %v2015_v10  ;;  %v114_v18 = vand.u32 4294901760, %v1678_v50  ;;  %v252_v62 = vsub.f32 %v1672_v49, %v2014_v41  ;;  %v2017_v55 = vand.u32 4294901760, %v1694_v46  ;;  %1186 = vmatpush3.bf16.msra.mxu0 %v1687_v4  ;;  %v1734_v10 = vld [vmem:[#allocation4 + $0x60] sm:$0xff] }
  0x45   :  { %v365_v45 = vand.u32 4294901760, %v364_v40  ;;  %v2020_v47 = vand.u32 4294901760, %v1697_v38  ;;  %v259_v34 = vsub.f32 %v1682_v11, %v2013_v3  ;;  %v1715_v33 = vsub.f32 %v1676_v44, %v111_v31 }
  0x46   :  { %v372_v56 = vand.u32 4294901760, %v371_v43  ;;  %v1718_v40 = vsub.f32 %v1678_v50, %v114_v18  ;;  %v253_v28 = vand.u32 4294901760, %v252_v62  ;;  %v378_v27 = vsub.f32 %v1694_v46, %v2017_v55 }
  0x47   :  { %v385_v43 = vsub.f32 %v1697_v38, %v2020_v47  ;;  %v1730_v23 = vpack.c.bf16 %v156_v58, %v153_v42  ;;  %v260_v3 = vand.u32 4294901760, %v259_v34  ;;  %v2021_v50 = vand.u32 4294901760, %v1715_v33 }
  0x48   :  { %v1219_v44 = vpack.c.bf16 %v372_v56, %v365_v45  ;;  %v2023_v41 = vand.u32 4294901760, %v1718_v40  ;;  %v379_v12 = vand.u32 4294901760, %v378_v27  ;;  %v165_v55 = vand.u32 4294901760, %v1720_v32  ;;  %v78_v27 = vld [vmem:[#allocation4 + $0xf0] sm:$0xff] }
  0x49   :  { %2046 = vst [vmem:[#allocation11_spill] sm:$0xff] %v1730_v23  ;;  %v386_v62 = vand.u32 4294901760, %v385_v43  ;;  %1188 = vmatprep.subr.bf16.mxu0 %v1730_v23  ;;  %v168_v13 = vand.u32 4294901760, %v1722_v29  ;;  %v1221_v42 = vpack.c.bf16 %v260_v3, %v253_v28  ;;  %v266_v34 = vsub.f32 %v1715_v33, %v2021_v50  ;;  %v79_v3 = vld [vmem:[#allocation4 + $0xf8] sm:$0xff] }
  0x4a   :  { %1220 = vmatprep.subr.bf16.mxu1 %v1219_v44  ;;  %v273_v58 = vsub.f32 %v1718_v40, %v2023_v41  ;;  %v1745_v45 = vpack.c.bf16 %v108_v59, %v105_v54  ;;  %v1748_v43 = vsub.f32 %v1720_v32, %v165_v55  ;;  %v117_v28 = vand.u32 4294901760, %v1734_v10 }
  0x4b   :  { %v1223_v56 = vpack.c.bf16 %v386_v62, %v379_v12  ;;  %v1751_v47 = vsub.f32 %v1722_v29, %v168_v13  ;;  %1222 = vmatpush3.bf16.msra.mxu1 %v1221_v42  ;;  %v267_v44 = vand.u32 4294901760, %v266_v34  ;;  %v120_v35 = vand.u32 4294901760, %v61_v36  ;;  %v62_v12 = vld [vmem:[#allocation4 + $0x70] sm:$0xff]  ;;  %v63_v62 = vld [vmem:[#allocation4 + $0x78] sm:$0xff] }
  0x4c   :  { %2047 = vst [vmem:[#allocation12_spill] sm:$0xff] %v1745_v45  ;;  %v274_v50 = vand.u32 4294901760, %v273_v58  ;;  %1190 = vmatpush3.bf16.msra.mxu0 %v1745_v45  ;;  %v1755_v41 = vpack.c.bf16 %v162_v6, %v159_v2  ;;  %v2027_v54 = vand.u32 4294901760, %v1748_v43  ;;  %v1760_v59 = vsub.f32 %v1734_v10, %v117_v28 }
  0x4d   :  { %1224 = vmatprep.subr.bf16.mxu1 %v1223_v56  ;;  %v2028_v32 = vand.u32 4294901760, %v1751_v47  ;;  %v171_v29 = vand.u32 4294901760, %v78_v27  ;;  %v1762_v42 = vsub.f32 %v61_v36, %v120_v35  ;;  %v174_v34 = vand.u32 4294901760, %v79_v3 }
  0x4e   :  { %2048 = vst [vmem:[#allocation13_spill] sm:$0xff] %v1755_v41  ;;  %v1225_v15 = vpack.c.bf16 %v274_v50, %v267_v44  ;;  %1192 = vmatprep.subr.bf16.mxu0 %v1755_v41  ;;  %v1765_v58 = vpack.c.bf16 %v114_v18, %v111_v31  ;;  %v392_v2 = vsub.f32 %v1748_v43, %v2027_v54  ;;  %v2037_v10 = vand.u32 4294901760, %v1760_v59 }
  0x4f   :  { %v399_v6 = vsub.f32 %v1751_v47, %v2028_v32  ;;  %v1774_v56 = vsub.f32 %v78_v27, %v171_v29  ;;  %v2042_v36 = vand.u32 4294901760, %v1762_v42  ;;  %v1777_v50 = vsub.f32 %v79_v3, %v174_v34 }
  0x50   :  { %2049 = vst [vmem:[#allocation14_spill] sm:$0xff] %v1765_v58  ;;  %1226 = vmatpush3.bf16.msra.mxu1 %v1225_v15  ;;  %1194 = vmatpush3.bf16.msra.mxu0 %v1765_v58  ;;  %v123_v31 = vand.u32 4294901760, %v62_v12  ;;  %v126_v18 = vand.u32 4294901760, %v63_v62  ;;  %v393_v44 = vand.u32 4294901760, %v392_v2  ;;  %v280_v54 = vsub.f32 %v1760_v59, %v2037_v10 }
  0x51   :  { %v400_v41 = vand.u32 4294901760, %v399_v6  ;;  %v405_v32 = vand.u32 4294901760, %v1774_v56  ;;  %v287_v15 = vsub.f32 %v1762_v42, %v2042_v36  ;;  %v412_v27 = vand.u32 4294901760, %v1777_v50 }
  0x52   :  { %v1788_v3 = vsub.f32 %v62_v12, %v123_v31  ;;  %v1790_v45 = vsub.f32 %v63_v62, %v126_v18  ;;  %v281_v23 = vand.u32 4294901760, %v280_v54  ;;  %v1793_v6 = vpack.c.bf16 %v168_v13, %v165_v55 }
  0x53   :  { %v1227_v58 = vpack.c.bf16 %v400_v41, %v393_v44  ;;  %v406_v2 = vsub.f32 %v1774_v56, %v405_v32  ;;  %v288_v4 = vand.u32 4294901760, %v287_v15  ;;  %v413_v10 = vsub.f32 %v1777_v50, %v412_v27 }
  0x54   :  { %v293_v60 = vand.u32 4294901760, %v1788_v3  ;;  %v300_v52 = vand.u32 4294901760, %v1790_v45  ;;  %1196 = vmatprep.subr.bf16.mxu0 %v1793_v6  ;;  %v1799_v12 = vpack.c.bf16 %v120_v35, %v117_v28  ;;  %v1801_v62 = vpack.c.bf16 %v174_v34, %v171_v29 }
  0x55   :  { %1228 = vmatprep.subr.bf16.mxu1 %v1227_v58  ;;  %v407_v36 = vand.u32 4294901760, %v406_v2  ;;  %v1803_v41 = vpack.c.bf16 %v126_v18, %v123_v31  ;;  %v1229_v54 = vpack.c.bf16 %v288_v4, %v281_v23  ;;  %v414_v13 = vand.u32 4294901760, %v413_v10 }
  0x56   :  { %v294_v55 = vsub.f32 %v1788_v3, %v293_v60  ;;  %v301_v44 = vsub.f32 %v1790_v45, %v300_v52  ;;  %1198 = vmatpush3.bf16.msra.mxu0 %v1799_v12  ;;  %v1235_v58 = vpack.c.bf16 %v1489_v19, %v1484_v14  ;;  %v1243_v34 = vpack.c.bf16 %v1569_v8, %v1563_v5 }
  0x57   :  { %1230 = vmatpush3.bf16.msra.mxu1 %v1229_v54  ;;  %v1231_v23 = vpack.c.bf16 %v414_v13, %v407_v36  ;;  %1200 = vmatprep.subr.bf16.mxu0 %v1801_v62  ;;  %v1247_v18 = vpack.c.bf16 %v1597_v39, %v1594_v37  ;;  %v1249_v36 = vpack.c.bf16 %v1623_v48, %v1607_v22  ;;  %v2053_v28 = vand.u32 4294901760, %v1583_v16 }
  0x58   :  { %v295_v4 = vand.u32 4294901760, %v294_v55  ;;  %v302_v29 = vand.u32 4294901760, %v301_v44  ;;  %v1251_v2 = vpack.c.bf16 %v1664_v57, %v1656_v51  ;;  %v1253_v54 = vpack.c.bf16 %v1682_v11, %v1672_v49 }
  0x59   :  { %1232 = vmatprep.subr.bf16.mxu1 %v1231_v23  ;;  %v1255_v13 = vpack.c.bf16 %v1697_v38, %v1694_v46  ;;  %v2052_v55 = vand.u32 4294901760, %v1575_v9  ;;  %v2055_v35 = vand.u32 4294901760, %v1664_v57  ;;  %v2063_v57 = vand.u32 4294901760, %v1748_v43 }
  0x5a   :  { %v1233_v31 = vpack.c.bf16 %v302_v29, %v295_v4  ;;  %1202 = vmatpush3.bf16.msra.mxu0 %v1803_v41  ;;  %v2050_v29 = vand.u32 4294901760, %v1563_v5  ;;  %v2056_v4 = vand.u32 4294901760, %v1672_v49  ;;  %v2057_v5 = vand.u32 4294901760, %v1682_v11 }
  0x5b   :  { %1236 = vmatprep.subr.bf16.mxu0 %v1235_v58  ;;  %v1853_v44 = vpack.c.bf16 %v2053_v28, %v2052_v55  ;;  %v2054_v58 = vand.u32 4294901760, %v1656_v51  ;;  %v2060_v28 = vand.u32 4294901760, %v1715_v33  ;;  %v2061_v51 = vand.u32 4294901760, %v1718_v40 }
  0x5c   :  { %1234 = vmatpush3.bf16.msra.mxu1 %v1233_v31  ;;  %v2051_v31 = vand.u32 4294901760, %v1569_v8  ;;  %v1865_v15 = vpack.c.bf16 %v2057_v5, %v2056_v4  ;;  %v2058_v8 = vand.u32 4294901760, %v1694_v46  ;;  %v2064_v49 = vand.u32 4294901760, %v1751_v47 }
  0x5d   :  { %1268 = vmatprep.subr.bf16.mxu1 %v1546_v53  ;;  %v1859_v23 = vpack.c.bf16 %v2055_v35, %v2054_v58  ;;  %v1877_v55 = vpack.c.bf16 %v2061_v51, %v2060_v28  ;;  %v2066_v11 = vand.u32 4294901760, %v1760_v59  ;;  %v2067_v46 = vand.u32 4294901760, %v1762_v42 }
  0x5e   :  { %v1847_v10 = vpack.c.bf16 %v2051_v31, %v2050_v29  ;;  %v2059_v29 = vand.u32 4294901760, %v1697_v38  ;;  %v1883_v35 = vpack.c.bf16 %v2064_v49, %v2063_v57  ;;  %v1891_v38 = vpack.c.bf16 %v412_v27, %v405_v32 }
  0x5f   :  { %2062 = vst [vmem:[#allocation15_spill] sm:$0xff] %v1877_v55  ;;  %v1889_v58 = vpack.c.bf16 %v2067_v46, %v2066_v11  ;;  %v1893_v4 = vpack.c.bf16 %v300_v52, %v293_v60 }
  0x60   :  { %v1871_v31 = vpack.c.bf16 %v2059_v29, %v2058_v8  ;;  %2065 = vst [vmem:[#allocation16_spill] sm:$0xff] %v1883_v35 }
  0xb5   :  { %v41_v5 = vpop.xlane.xlu0 %40 }
  0xb6   :  { %v42_v8 = vsub.f32 %v1476_v0, %v41_v5  ;;  %v43_v29 = vsub.f32 %v1478_v1, %v41_v5  ;;  %v2068_v5 = vpack.c.bf16 %v1493_v21, %v1491_v20 }
  0xb8   :  { %v44_v28 = vmul.f32 1.442695, %v42_v8  ;;  %v46_v51 = vmul.f32 1.442695, %v43_v29  ;;  %v2069_v8 = vld [vmem:[#allocation8_spill] sm:$0xff]  ;;  %v2070_v29 = vpack.c.bf16 %v1499_v25, %v1497_v24 }
  0xba   :  { %1370 = vpow2.f32 %v44_v28  ;;  %v2071_v28 = vld [vmem:[#allocation9_spill] sm:$0xff] }
  0xbb   :  { %1372 = vpow2.f32 %v46_v51  ;;  %v2072_v51 = vpack.c.bf16 %v1510_v30, %v1504_v26 }
  0xc4   :  { %v1371_v57 = vpop.eup %1370 }
  0xc5   :  { %v1373_v49 = vpop.eup %1372  ;;  %v1897_v35 = vand.u32 4294901760, %v1371_v57 }
  0xc6   :  { %v176_v55 = vand.u32 4294901760, %v1373_v49 }
  0xc7   :  { %v183_v11 = vsub.f32 %v1371_v57, %v1897_v35  ;;  %v2073_v57 = vld [vmem:[#allocation10_spill] sm:$0xff] }
  0xc8   :  { %417 = vmatprep.mubr.f32.mxu1 %v176_v55  ;;  %v177_v32 = vsub.f32 %v1373_v49, %v176_v55  ;;  %v2074_v49 = vld [vmem:[#allocation11_spill] sm:$0xff] }
  0xc9   :  { %419 = vmatmul.mubr.f32.vlgmr.msra.gmra.mrb[0].mxu1 %v1897_v35  ;;  %v184_v60 = vand.u32 4294901760, %v183_v11 }
  0xca   :  { %1270 = vmatpush3.bf16.msra.mxu1 %v1557_v63  ;;  %v178_v0 = vand.u32 4294901760, %v177_v32 }
  0xcb   :  { %1272 = vmatprep.subr.bf16.mxu1 %v1566_v7  ;;  %v185_v1 = vsub.f32 %v183_v11, %v184_v60 }
  0xcc   :  { %661 = vmatprep.mubr.f32.mxu1 %v178_v0  ;;  %v179_v52 = vsub.f32 %v177_v32, %v178_v0  ;;  %v2075_v0 = vpack.c.bf16 %v1583_v16, %v1575_v9  ;;  %v2079_v9 = vpack.c.bf16 %v1718_v40, %v1715_v33  ;;  %v2080_v16 = vpack.c.bf16 %v1751_v47, %v1748_v43 }
  0xcd   :  { %v186_v27 = vand.u32 4294901760, %v185_v1  ;;  %v2077_v1 = vld [vmem:[#allocation13_spill] sm:$0xff]  ;;  %v2082_v33 = vpack.c.bf16 %v1777_v50, %v1774_v56  ;;  %v2083_v40 = vand.u32 4294901760, %v1484_v14  ;;  %v2087_v43 = vand.u32 4294901760, %v1493_v21 }
  0xce   :  { %1274 = vmatpush3.bf16.msra.mxu1 %v1588_v17  ;;  %v180_v46 = vand.u32 4294901760, %v179_v52  ;;  %v2078_v52 = vld [vmem:[#allocation14_spill] sm:$0xff]  ;;  %v2088_v14 = vand.u32 4294901760, %v1497_v24  ;;  %v2093_v21 = vand.u32 4294901760, %v1597_v39  ;;  %v2097_v39 = vld [vmem:[#allocation16_spill] sm:$0xff] }
  0xcf   :  { %1276 = vmatprep.subr.bf16.mxu1 %v1639_v61 }
  0xd0   :  { %181 = vmatprep.mubr.f32.mxu0 %v180_v46 }
  0xd1   :  { %187 = vmatmul.mubr.f32.vlgmr.msra.gmra.mrb[0].mxu0 %v186_v27 }
  0xd2   :  { %1238 = vmatpush3.bf16.msra.mxu0 %v2068_v5  ;;  %1278 = vmatpush3.bf16.msra.mxu1 %v2069_v8 }
  0xd3   :  { %554 = vmatprep.mubr.f32.mxu0 %v177_v32  ;;  %1240 = vmatprep.subr.bf16.mxu0 %v2070_v29  ;;  %v2076_v32 = vld [vmem:[#allocation12_spill] sm:$0xff] }
  0xd4   :  { %1280 = vmatprep.subr.bf16.mxu1 %v2071_v28 }
  0xd6   :  { %1242 = vmatpush3.bf16.msra.mxu0 %v2072_v51  ;;  %1282 = vmatpush3.bf16.msra.mxu1 %v2073_v57 }
  0xd7   :  { %1244 = vmatprep.subr.bf16.mxu0 %v1243_v34  ;;  %1284 = vmatprep.subr.bf16.mxu1 %v2074_v49  ;;  %v2081_v34 = vpack.c.bf16 %v1762_v42, %v1760_v59 }
  0xda   :  { %1246 = vmatpush3.bf16.msra.mxu0 %v2075_v0  ;;  %1286 = vmatpush3.bf16.msra.mxu1 %v2076_v32 }
  0xdb   :  { %1248 = vmatprep.subr.bf16.mxu0 %v1247_v18  ;;  %1288 = vmatprep.subr.bf16.mxu1 %v2077_v1  ;;  %v2084_v18 = vand.u32 4294901760, %v1489_v19  ;;  %v2089_v19 = vand.u32 4294901760, %v1499_v25  ;;  %v2094_v25 = vand.u32 4294901760, %v1607_v22  ;;  %v1428_v22 = vmov 0  }
  0xdc   :  { %1369 = vset.pattern.permute.xlu0 %v1428_v22 }
  0xdd   :  { %v1299_v47 = vpack.c.bf16 %v2084_v18, %v2083_v40  ;;  %v1303_v42 = vpack.c.bf16 %v2089_v19, %v2088_v14 }
  0xde   :  { %1250 = vmatpush3.bf16.msra.mxu0 %v1249_v36  ;;  %1290 = vmatpush3.bf16.msra.mxu1 %v2078_v52 }
  0xdf   :  { %1252 = vmatprep.subr.bf16.mxu0 %v1251_v2  ;;  %1292 = vmatprep.subr.bf16.mxu1 %v1793_v6 }
  0xe2   :  { %1254 = vmatpush3.bf16.msra.mxu0 %v1253_v54  ;;  %1294 = vmatpush3.bf16.msra.mxu1 %v1799_v12 }
  0xe3   :  { %1256 = vmatprep.subr.bf16.mxu0 %v1255_v13  ;;  %1296 = vmatprep.subr.bf16.mxu1 %v1801_v62 }
  0xe6   :  { %1258 = vmatpush3.bf16.msra.mxu0 %v2079_v9  ;;  %1298 = vmatpush3.bf16.msra.mxu1 %v1803_v41 }
  0xe7   :  { %1260 = vmatprep.subr.bf16.mxu0 %v2080_v16  ;;  %1332 = vmatprep.subr.bf16.mxu1 %v1546_v53  ;;  %v2085_v53 = vpack.c.bf16 %v1790_v45, %v1788_v3 }
  0xe9   :  { %665 = vmatmul.mubr.f32.vlgmr.msra.gmra.mrb[2].mxu1 %v184_v60 }
  0xea   :  { %1262 = vmatpush3.bf16.msra.mxu0 %v2081_v34  ;;  %1334 = vmatpush3.bf16.msra.mxu1 %v1557_v63  ;;  %v2086_v63 = vand.u32 4294901760, %v1491_v20  ;;  %v2092_v20 = vand.u32 4294901760, %v1594_v37  ;;  %v2096_v37 = vld [vmem:[#allocation15_spill] sm:$0xff] }
  0xeb   :  { %935 = vmatprep.mubr.f32.mxu1 %v176_v55  ;;  %1264 = vmatprep.subr.bf16.mxu0 %v2082_v33 }
  0xec   :  { %1336 = vmatprep.subr.bf16.mxu1 %v1566_v7  ;;  %v1301_v59 = vpack.c.bf16 %v2087_v43, %v2086_v63  ;;  %v2090_v7 = vand.u32 4294901760, %v1504_v26  ;;  %v1311_v24 = vpack.c.bf16 %v2093_v21, %v2092_v20  ;;  %v2095_v26 = vand.u32 4294901760, %v1623_v48 }
  0xee   :  { %1266 = vmatpush3.bf16.msra.mxu0 %v2085_v53  ;;  %1338 = vmatpush3.bf16.msra.mxu1 %v1588_v17  ;;  %v2091_v17 = vand.u32 4294901760, %v1510_v30  ;;  %v1313_v30 = vpack.c.bf16 %v2095_v26, %v2094_v25 }
  0xef   :  { %1300 = vmatprep.subr.bf16.mxu0 %v1299_v47  ;;  %1340 = vmatprep.subr.bf16.mxu1 %v1639_v61 }
  0xf0   :  { %v1305_v45 = vpack.c.bf16 %v2091_v17, %v2090_v7 }
  0xf1   :  { %557 = vmatmul.mubr.f32.vlgmr.msra.gmra.mrb[2].mxu0 %v183_v11 }
  0xf2   :  { %1302 = vmatpush3.bf16.msra.mxu0 %v1301_v59  ;;  %831 = vmatprep.mubr.f32.mxu0 %v176_v55 }
  0xf3   :  { %1342 = vmatpush3.bf16.msra.mxu1 %v2069_v8  ;;  %1304 = vmatprep.subr.bf16.mxu0 %v1303_v42 }
  0xf4   :  { %1344 = vmatprep.subr.bf16.mxu1 %v2071_v28 }
  0xf6   :  { %1306 = vmatpush3.bf16.msra.mxu0 %v1305_v45 }
  0xf7   :  { %1346 = vmatpush3.bf16.msra.mxu1 %v2073_v57  ;;  %1308 = vmatprep.subr.bf16.mxu0 %v1847_v10 }
  0xf8   :  { %1348 = vmatprep.subr.bf16.mxu1 %v2074_v49 }
  0xfa   :  { %1310 = vmatpush3.bf16.msra.mxu0 %v1853_v44 }
  0xfb   :  { %1350 = vmatpush3.bf16.msra.mxu1 %v2076_v32  ;;  %1312 = vmatprep.subr.bf16.mxu0 %v1311_v24 }
  0xfc   :  { %1352 = vmatprep.subr.bf16.mxu1 %v2077_v1 }
  0xfe   :  { %1314 = vmatpush3.bf16.msra.mxu0 %v1313_v30 }
  0xff   :  { %1354 = vmatpush3.bf16.msra.mxu1 %v2078_v52  ;;  %1316 = vmatprep.subr.bf16.mxu0 %v1859_v23 }
 0x100   :  { %1356 = vmatprep.subr.bf16.mxu1 %v1793_v6 }
 0x102   :  { %1318 = vmatpush3.bf16.msra.mxu0 %v1865_v15 }
 0x103   :  { %1358 = vmatpush3.bf16.msra.mxu1 %v1799_v12  ;;  %1320 = vmatprep.subr.bf16.mxu0 %v1871_v31 }
 0x104   :  { %1360 = vmatprep.subr.bf16.mxu1 %v1801_v62 }
 0x106   :  { %1322 = vmatpush3.bf16.msra.mxu0 %v2096_v37 }
 0x107   :  { %1362 = vmatpush3.bf16.msra.mxu1 %v1803_v41  ;;  %1324 = vmatprep.subr.bf16.mxu0 %v2097_v39 }
 0x10a   :  { %937 = vmatmul.mubr.f32.vlgmr.msra.gmra.mrb[4].mxu1 %v1897_v35  ;;  %1326 = vmatpush3.bf16.msra.mxu0 %v1889_v58 }
 0x10b   :  { %1328 = vmatprep.subr.bf16.mxu0 %v1891_v38 }
 0x10e   :  { %1330 = vmatpush3.bf16.msra.mxu0 %v1893_v4 }
 0x111   :  { %833 = vmatmul.mubr.f32.vlgmr.msra.gmra.mrb[4].mxu0 %v1897_v35 }
 0x19c   :  { %v1028_v48 = vpop.f32.mrb[0].mxu1 }
 0x19d   :  { %v1029_v61 = vpop.f32.mrb[1].mxu1 }
 0x19e   :  { %v1030_v56 = vadd.f32 %v1029_v61, %v1028_v48 }
 0x1a4   :  { %v993_v50 = vpop.f32.mrb[0].mxu0 }
 0x1a5   :  { %v994_v3 = vpop.f32.mrb[1].mxu0 }
 0x1a6   :  { %v995_v6 = vadd.f32 %v994_v3, %v993_v50 }
 0x1a8   :  { %v421_v12 = vadd.f32 %v1030_v56, %v995_v6 }
 0x1bc   :  { %v1098_v62 = vpop.f32.mrb[2].mxu1 }
 0x1bd   :  { %v1099_v41 = vpop.f32.mrb[3].mxu1 }
 0x1be   :  { %v1100_v15 = vadd.f32 %v1099_v41, %v1098_v62 }
 0x1c4   :  { %v1063_v10 = vpop.f32.mrb[2].mxu0 }
 0x1c5   :  { %v1064_v36 = vpop.f32.mrb[3].mxu0 }
 0x1c6   :  { %v1065_v2 = vadd.f32 %v1064_v36, %v1063_v10 }
 0x1c8   :  { %v559_v54 = vadd.f32 %v1065_v2, %v421_v12 }
 0x1ca   :  { %v667_v13 = vadd.f32 %v1100_v15, %v559_v54 }
 0x1dd   :  { %v1168_v44 = vpop.f32.mrb[4].mxu1 }
 0x1de   :  { %v1169_v23 = vpop.f32.mrb[5].mxu1 }
 0x1df   :  { %v1170_v31 = vadd.f32 %v1169_v23, %v1168_v44 }
 0x1e4   :  { %v1133_v55 = vpop.f32.mrb[4].mxu0 }
 0x1e5   :  { %v1134_v35 = vpop.f32.mrb[5].mxu0 }
 0x1e6   :  { %v1135_v58 = vadd.f32 %v1134_v35, %v1133_v55 }
 0x1e8   :  { %v835_v38 = vadd.f32 %v1135_v58, %v667_v13 }
 0x1ea   :  { %v939_v4 = vadd.f32 %v1170_v31, %v835_v38 }
 0x1ec   :  { %1374 = vrcp.f32 %v939_v4 }
 0x1f6   :  { %v1375_v11 = vpop.eup %1374 }
 0x1f7   :  { %945 = vperm.xlu0 %1369, %v1375_v11  }
 0x276   :  { %v946_v60 = vpop.permute.xlu0 %945 }
 0x277   :  { %v948_v27 = vmul.f32 %v946_v60, %v939_v4 }
 0x279   :  { %950 = vrot.lane.b32.xlu1 %v948_v27, %s1429_s1 }
 0x2eb   :  { %v951_v46 = vpop.permute.xlu1 %950 }
 0x2ec   :  { %954 = vst.msk [vmem:[%s2000_s2] sm:$0xff] %vm953_vm0, %v951_v46 }
 0x2ed   :  { %959 = vsyncpa [#allocation3], 1 }
 0x2ee   :  { %960 = vsyncpa [#allocation5], 1 }

</bundles_post_ra>
